<compile_context>
chip_gen: v6e
topology: v6e:2x2x1
jax: 0.10.0
libtpu: 0.0.40
codegen_flags: <defaults>
</compile_context>

<pallas_src>
import functools

import jax
import jax.numpy as jnp
import numpy as np
from jax import lax
from jax.experimental import pallas as pl
from jax.experimental.pallas import tpu as pltpu


# ----------------------------- Pallas kernel -------------------------------


def _conv_relu_kernel(x_ref, w_ref, o_ref, *, k, wp, l_valid):
    """One batch image: ReLU( sum_t W_t @ shifted_window_t(x) ), all in VMEM/vregs.

    x_ref: (1, Cin, L_pad)    zero-padded input, flattened spatially (row-major Hp*Wp),
                              with (k-1)*Wp+(k-1) extra zero columns as tail padding.
    w_ref: (k*k, Cout, Cin)   per-tap weights, tap order t = di*k + dj.
    o_ref: (1, Cout, L_valid) conv output in flat (Hp*Wp) layout; the wrapper slices the
                              valid (Ho, Wo) window (this also handles stride > 1).
    """
    xv = x_ref[0]  # (Cin, L_pad) f32

    def tap(t):
        di, dj = t // k, t % k
        off = di * wp + dj
        window = xv[:, off:off + l_valid]          # static lane-offset slice, (Cin, L_valid)
        return jnp.dot(w_ref[t], window, preferred_element_type=jnp.float32)

    acc = tap(0)
    for t in range(1, k * k):                      # static, fully unrolled (9 taps)
        acc = acc + tap(t)

    # TODO(synk): BINorm with norm_type='None' / affine=False is an identity -> nothing to add.
    o_ref[0] = jnp.maximum(acc, 0.0).astype(o_ref.dtype)


# ------------------------------- wrapper ------------------------------------


@functools.partial(jax.jit, static_argnames=("kernel_size", "stride", "padding"))
def basic_conv2d(x_nchw, w, *, kernel_size=3, stride=1, padding=1):
    """Forward pass of BasicConv2D (norm_type='None'). Input/output NCHW float32."""
    n, cin, h, w_in = x_nchw.shape
    cout = w.shape[0]
    k = kernel_size
    hp, wp = h + 2 * padding, w_in + 2 * padding
    ho = (hp - k) // stride + 1
    wo = (wp - k) // stride + 1
    l_valid = hp * wp
    tail = (k - 1) * wp + (k - 1)
    l_pad = l_valid + tail

    # Zero-pad spatially, flatten to (N, Cin, Hp*Wp), add zero tail so every shifted
    # window slice inside the kernel stays in bounds.
    x = x_nchw.astype(jnp.float32)
    xp = jnp.pad(x, ((0, 0), (0, 0), (padding, padding), (padding, padding)))
    x_flat = jnp.pad(xp.reshape(n, cin, l_valid), ((0, 0), (0, 0), (0, tail)))

    # Per-tap weight matrices: w_taps[di*k + dj] = W[:, :, di, dj]  -> (k*k, Cout, Cin)
    w_taps = jnp.transpose(w.astype(jnp.float32), (2, 3, 0, 1)).reshape(k * k, cout, cin)

    kernel = functools.partial(_conv_relu_kernel, k=k, wp=wp, l_valid=l_valid)
    out_flat = pl.pallas_call(
        kernel,
        out_shape=jax.ShapeDtypeStruct((n, cout, l_valid), jnp.float32),
        grid_spec=pltpu.PrefetchScalarGridSpec(
            num_scalar_prefetch=0,
            grid=(n,),  # one whole image per grid step; parallel across TCs on v7x
            in_specs=[
                pl.BlockSpec((1, cin, l_pad), lambda i: (i, 0, 0)),
                pl.BlockSpec((k * k, cout, cin), lambda i: (0, 0, 0)),  # resident weights
            ],
            out_specs=pl.BlockSpec((1, cout, l_valid), lambda i: (i, 0, 0)),
        ),
        compiler_params=pltpu.CompilerParams(
            dimension_semantics=("parallel",),
        ),
    )(x_flat, w_taps)

    # Flat (Cout, Hp*Wp) -> NCHW valid window; a reshape + static slice, no transpose.
    out = out_flat.reshape(n, cout, hp, wp)
    return out[:, :, 0:stride * ho:stride, 0:stride * wo:stride]


# ------------------------------ reference (JAX) -----------------------------


def _ref_forward(x, w, stride, padding):
    dn = ("NCHW", "OIHW", "NCHW")
    y = lax.conv_general_dilated(
        x, w, (stride, stride), [(padding, padding), (padding, padding)],
        dimension_numbers=dn)
    return jnp.maximum(y, 0.0)


# ----------------------------------- main -----------------------------------

if __name__ == "__main__":
    # BasicConv2D(in_channels=4, out_channels=8, out_height=16, out_width=16,
    #             norm_bin=1, norm_type='None', norm_affine=False,
    #             kernel_size=3, stride=1, padding=1)
    N, CIN, COUT, H, W, K = 2, 4, 8, 16, 16, 3
    STRIDE, PAD = 1, 1

    key = jax.random.PRNGKey(0)
    kx, kw = jax.random.split(key, 2)

    x = jax.random.normal(kx, (N, CIN, H, W), dtype=jnp.float32)
    # Kaiming-style deterministic init (scale by fan-in), matching Conv2d shapes.
    w = jax.random.normal(kw, (COUT, CIN, K, K), jnp.float32) / np.sqrt(CIN * K * K)

    out = basic_conv2d(x, w, kernel_size=K, stride=STRIDE, padding=PAD)
    out = jax.block_until_ready(out)

    ref = jax.block_until_ready(_ref_forward(x, w, STRIDE, PAD))
    np.testing.assert_allclose(np.asarray(out), np.asarray(ref), rtol=1e-4, atol=1e-4)

    print("KERNEL_OK")
</pallas_src>

<mosaic_0001>
module attributes {stable_mosaic.version = 11 : i64} {
  func.func @_conv_relu_kernel(%arg0: i32, %arg1: memref<1x4x362xf32, #tpu.memory_space<vmem>>, %arg2: memref<9x8x4xf32, #tpu.memory_space<vmem>>, %arg3: memref<1x8x324xf32, #tpu.memory_space<vmem>>) attributes {dimension_semantics = [#tpu.dimension_semantics<parallel>], iteration_bounds = array<i64: 2>, scalar_prefetch = 0 : i64, scratch_operands = 0 : i64, tpu.core_type = #tpu.core_type<tc>, window_params = [{transform_indices = @transform_0, window_bounds = array<i64: 1, 4, 362>}, {pipeline_mode = #tpu.pipeline_mode<synchronous>, transform_indices = @transform_1, window_bounds = array<i64: 9, 8, 4>}, {transform_indices = @transform_2, window_bounds = array<i64: 1, 8, 324>}]} {
    %c0 = arith.constant 0 : index
    %c0_0 = arith.constant 0 : index
    %c0_1 = arith.constant 0 : index
    %0 = vector.load %arg1[%c0, %c0_0, %c0_1] : memref<1x4x362xf32, #tpu.memory_space<vmem>>, vector<1x4x362xf32>
    %1 = vector.shape_cast %0 : vector<1x4x362xf32> to vector<4x362xf32>
    %2 = vector.extract_strided_slice %1 {offsets = [0, 0], sizes = [4, 324], strides = [1, 1]} : vector<4x362xf32> to vector<4x324xf32>
    %c0_2 = arith.constant 0 : index
    %c0_3 = arith.constant 0 : index
    %c0_4 = arith.constant 0 : index
    %3 = vector.load %arg2[%c0_2, %c0_3, %c0_4] : memref<9x8x4xf32, #tpu.memory_space<vmem>>, vector<1x8x4xf32>
    %4 = vector.shape_cast %3 : vector<1x8x4xf32> to vector<8x4xf32>
    %cst = arith.constant dense<0.000000e+00> : vector<8x324xf32>
    %5 = tpu.matmul %4, %2, %cst {dimension_numbers = #tpu.dot_dimension_numbers<[1], [0], [0], [1], [0, 0, 1, 1], [], []>} : vector<8x4xf32>, vector<4x324xf32>, vector<8x324xf32> -> vector<8x324xf32>
    %6 = vector.extract_strided_slice %1 {offsets = [0, 1], sizes = [4, 324], strides = [1, 1]} : vector<4x362xf32> to vector<4x324xf32>
    %c1 = arith.constant 1 : index
    %c0_5 = arith.constant 0 : index
    %c0_6 = arith.constant 0 : index
    %7 = vector.load %arg2[%c1, %c0_5, %c0_6] : memref<9x8x4xf32, #tpu.memory_space<vmem>>, vector<1x8x4xf32>
    %8 = vector.shape_cast %7 : vector<1x8x4xf32> to vector<8x4xf32>
    %cst_7 = arith.constant dense<0.000000e+00> : vector<8x324xf32>
    %9 = tpu.matmul %8, %6, %cst_7 {dimension_numbers = #tpu.dot_dimension_numbers<[1], [0], [0], [1], [0, 0, 1, 1], [], []>} : vector<8x4xf32>, vector<4x324xf32>, vector<8x324xf32> -> vector<8x324xf32>
    %10 = arith.addf %5, %9 : vector<8x324xf32>
    %11 = vector.extract_strided_slice %1 {offsets = [0, 2], sizes = [4, 324], strides = [1, 1]} : vector<4x362xf32> to vector<4x324xf32>
    %c2 = arith.constant 2 : index
    %c0_8 = arith.constant 0 : index
    %c0_9 = arith.constant 0 : index
    %12 = vector.load %arg2[%c2, %c0_8, %c0_9] : memref<9x8x4xf32, #tpu.memory_space<vmem>>, vector<1x8x4xf32>
    %13 = vector.shape_cast %12 : vector<1x8x4xf32> to vector<8x4xf32>
    %cst_10 = arith.constant dense<0.000000e+00> : vector<8x324xf32>
    %14 = tpu.matmul %13, %11, %cst_10 {dimension_numbers = #tpu.dot_dimension_numbers<[1], [0], [0], [1], [0, 0, 1, 1], [], []>} : vector<8x4xf32>, vector<4x324xf32>, vector<8x324xf32> -> vector<8x324xf32>
    %15 = arith.addf %10, %14 : vector<8x324xf32>
    %16 = vector.extract_strided_slice %1 {offsets = [0, 18], sizes = [4, 324], strides = [1, 1]} : vector<4x362xf32> to vector<4x324xf32>
    %c3 = arith.constant 3 : index
    %c0_11 = arith.constant 0 : index
    %c0_12 = arith.constant 0 : index
    %17 = vector.load %arg2[%c3, %c0_11, %c0_12] : memref<9x8x4xf32, #tpu.memory_space<vmem>>, vector<1x8x4xf32>
    %18 = vector.shape_cast %17 : vector<1x8x4xf32> to vector<8x4xf32>
    %cst_13 = arith.constant dense<0.000000e+00> : vector<8x324xf32>
    %19 = tpu.matmul %18, %16, %cst_13 {dimension_numbers = #tpu.dot_dimension_numbers<[1], [0], [0], [1], [0, 0, 1, 1], [], []>} : vector<8x4xf32>, vector<4x324xf32>, vector<8x324xf32> -> vector<8x324xf32>
    %20 = arith.addf %15, %19 : vector<8x324xf32>
    %21 = vector.extract_strided_slice %1 {offsets = [0, 19], sizes = [4, 324], strides = [1, 1]} : vector<4x362xf32> to vector<4x324xf32>
    %c4 = arith.constant 4 : index
    %c0_14 = arith.constant 0 : index
    %c0_15 = arith.constant 0 : index
    %22 = vector.load %arg2[%c4, %c0_14, %c0_15] : memref<9x8x4xf32, #tpu.memory_space<vmem>>, vector<1x8x4xf32>
    %23 = vector.shape_cast %22 : vector<1x8x4xf32> to vector<8x4xf32>
    %cst_16 = arith.constant dense<0.000000e+00> : vector<8x324xf32>
    %24 = tpu.matmul %23, %21, %cst_16 {dimension_numbers = #tpu.dot_dimension_numbers<[1], [0], [0], [1], [0, 0, 1, 1], [], []>} : vector<8x4xf32>, vector<4x324xf32>, vector<8x324xf32> -> vector<8x324xf32>
    %25 = arith.addf %20, %24 : vector<8x324xf32>
    %26 = vector.extract_strided_slice %1 {offsets = [0, 20], sizes = [4, 324], strides = [1, 1]} : vector<4x362xf32> to vector<4x324xf32>
    %c5 = arith.constant 5 : index
    %c0_17 = arith.constant 0 : index
    %c0_18 = arith.constant 0 : index
    %27 = vector.load %arg2[%c5, %c0_17, %c0_18] : memref<9x8x4xf32, #tpu.memory_space<vmem>>, vector<1x8x4xf32>
    %28 = vector.shape_cast %27 : vector<1x8x4xf32> to vector<8x4xf32>
    %cst_19 = arith.constant dense<0.000000e+00> : vector<8x324xf32>
    %29 = tpu.matmul %28, %26, %cst_19 {dimension_numbers = #tpu.dot_dimension_numbers<[1], [0], [0], [1], [0, 0, 1, 1], [], []>} : vector<8x4xf32>, vector<4x324xf32>, vector<8x324xf32> -> vector<8x324xf32>
    %30 = arith.addf %25, %29 : vector<8x324xf32>
    %31 = vector.extract_strided_slice %1 {offsets = [0, 36], sizes = [4, 324], strides = [1, 1]} : vector<4x362xf32> to vector<4x324xf32>
    %c6 = arith.constant 6 : index
    %c0_20 = arith.constant 0 : index
    %c0_21 = arith.constant 0 : index
    %32 = vector.load %arg2[%c6, %c0_20, %c0_21] : memref<9x8x4xf32, #tpu.memory_space<vmem>>, vector<1x8x4xf32>
    %33 = vector.shape_cast %32 : vector<1x8x4xf32> to vector<8x4xf32>
    %cst_22 = arith.constant dense<0.000000e+00> : vector<8x324xf32>
    %34 = tpu.matmul %33, %31, %cst_22 {dimension_numbers = #tpu.dot_dimension_numbers<[1], [0], [0], [1], [0, 0, 1, 1], [], []>} : vector<8x4xf32>, vector<4x324xf32>, vector<8x324xf32> -> vector<8x324xf32>
    %35 = arith.addf %30, %34 : vector<8x324xf32>
    %36 = vector.extract_strided_slice %1 {offsets = [0, 37], sizes = [4, 324], strides = [1, 1]} : vector<4x362xf32> to vector<4x324xf32>
    %c7 = arith.constant 7 : index
    %c0_23 = arith.constant 0 : index
    %c0_24 = arith.constant 0 : index
    %37 = vector.load %arg2[%c7, %c0_23, %c0_24] : memref<9x8x4xf32, #tpu.memory_space<vmem>>, vector<1x8x4xf32>
    %38 = vector.shape_cast %37 : vector<1x8x4xf32> to vector<8x4xf32>
    %cst_25 = arith.constant dense<0.000000e+00> : vector<8x324xf32>
    %39 = tpu.matmul %38, %36, %cst_25 {dimension_numbers = #tpu.dot_dimension_numbers<[1], [0], [0], [1], [0, 0, 1, 1], [], []>} : vector<8x4xf32>, vector<4x324xf32>, vector<8x324xf32> -> vector<8x324xf32>
    %40 = arith.addf %35, %39 : vector<8x324xf32>
    %41 = vector.extract_strided_slice %1 {offsets = [0, 38], sizes = [4, 324], strides = [1, 1]} : vector<4x362xf32> to vector<4x324xf32>
    %c8 = arith.constant 8 : index
    %c0_26 = arith.constant 0 : index
    %c0_27 = arith.constant 0 : index
    %42 = vector.load %arg2[%c8, %c0_26, %c0_27] : memref<9x8x4xf32, #tpu.memory_space<vmem>>, vector<1x8x4xf32>
    %43 = vector.shape_cast %42 : vector<1x8x4xf32> to vector<8x4xf32>
    %cst_28 = arith.constant dense<0.000000e+00> : vector<8x324xf32>
    %44 = tpu.matmul %43, %41, %cst_28 {dimension_numbers = #tpu.dot_dimension_numbers<[1], [0], [0], [1], [0, 0, 1, 1], [], []>} : vector<8x4xf32>, vector<4x324xf32>, vector<8x324xf32> -> vector<8x324xf32>
    %45 = arith.addf %40, %44 : vector<8x324xf32>
    %cst_29 = arith.constant 0.000000e+00 : f32
    %46 = vector.broadcast %cst_29 : f32 to vector<8x324xf32>
    %47 = arith.maximumf %45, %46 : vector<8x324xf32>
    %c0_30 = arith.constant 0 : index
    %c0_31 = arith.constant 0 : index
    %c0_32 = arith.constant 0 : index
    %48 = vector.load %arg3[%c0_30, %c0_31, %c0_32] : memref<1x8x324xf32, #tpu.memory_space<vmem>>, vector<1x8x324xf32>
    %49 = vector.shape_cast %48 : vector<1x8x324xf32> to vector<8x324xf32>
    %50 = vector.shape_cast %47 : vector<8x324xf32> to vector<1x8x324xf32>
    tpu.vector_store %arg3[%c0_30, %c0_31, %c0_32], %50 {strides = array<i32>} : memref<1x8x324xf32, #tpu.memory_space<vmem>>, vector<1x8x324xf32>,
    return
  }
  func.func @transform_0(%arg0: i32) -> (i32, i32, i32) {
    %c0_i32 = arith.constant 0 : i32
    %c0_i32_0 = arith.constant 0 : i32
    %c0_i32_1 = arith.constant 0 : i32
    return %arg0, %c0_i32, %c0_i32_0 : i32, i32, i32
  }
  func.func @transform_1(%arg0: i32) -> (i32, i32, i32) {
    %c0_i32 = arith.constant 0 : i32
    %c0_i32_0 = arith.constant 0 : i32
    %c0_i32_1 = arith.constant 0 : i32
    %c0_i32_2 = arith.constant 0 : i32
    return %c0_i32, %c0_i32_0, %c0_i32_1 : i32, i32, i32
  }
  func.func @transform_2(%arg0: i32) -> (i32, i32, i32) {
    %c0_i32 = arith.constant 0 : i32
    %c0_i32_0 = arith.constant 0 : i32
    %c0_i32_1 = arith.constant 0 : i32
    return %arg0, %c0_i32, %c0_i32_0 : i32, i32, i32
  }
}

</mosaic_0001>

<bundles_post_ra>
// kernel: basic_conv2d.1
= control target key start
LH: loop header
LB: loop body
LE: loop exit
PB: predicated region body
PF: predicated region fallthrough
CT: control target
= control target key end

     0   :  { %s1852_s9 = smov 0   ;;  %s2000_s0 = inlined_call_operand.vmem [shape: f32[2,4,362], index: 0, kind: input, shape index: {}]   ;;  %s2001_s1 = inlined_call_operand.vmem [shape: f32[9,8,4], index: 1, kind: input, shape index: {}]   ;;  %s2002_s2 = inlined_call_operand.vmem [shape: f32[2,8,324], index: 2, kind: output, shape index: {}]  }
   0x1 LB: > { %s1673_s10 = sadd.s32 4294967295, %s1825_s9   ;;  %p1677_p0 = scmp.ge.s32.totalorder %s1825_s9, 1  ;;  %s1825_s9 = sphi %s1852_s9, %s12_s9  }
   0x2   : > { %p112_p1 = scmp.lt.s32.totalorder %s1825_s9, 3 }
   0x4   : > { %p113_p2 = pnand %p1677_p0, %p112_p1 }
   0x5   : > { %p134_p3 = scmp.lt.s32.totalorder (!%p113_p2), %s1673_s10, 1  ;;  %s1829_s15 = smov (!%p113_p2), 127  }
   0x6   : > { %116 = sbr.rel (%p113_p2) target bundleno = 378 (0x17a), region = 28  ;;  %s1830_s16 = smov (!%p113_p2), 126  }
   0x7   : > { %s1831_s17 = smov (!%p113_p2), 110   ;;  %s1832_s18 = smov (!%p113_p2), 109  }
   0x8   : > { %s1833_s19 = smov (!%p113_p2), 108   ;;  %s1834_s20 = smov (!%p113_p2), 92  }
   0x9   : > { %s1835_s21 = smov (!%p113_p2), 91   ;;  %s1836_s22 = smov (!%p113_p2), 90  }
   0xb   : > { %v1827_v0 = vmov 0.0   ;;  %vm1828_vm0 = vmmov 0   ;;  %s2004_s10 = smov (!%p134_p3, %s1673_s10), 1  ;;  %vm165_vm1 = vcmask 1043456   ;;  %v1680_v4 = vld [vmem:[%s2001_s1 + $0x8] sm:$0xff]  ;;  %vm161_vm2 = vcmask 31744  }
   0xc   : > { %1753 = vmatprep.subr.mxu1 %v1827_v0  ;;  %1755 = vmatprep.mubr.msk.f32.mxu1 %vm1828_vm0, %v1827_v0  ;;  %s1798_s11 = smul.u32 12, %s2004_s10  ;;  %v146_v7 = vld [vmem:[%s2001_s1] sm:$0xff]  ;;  %vm158_vm3 = vcmask 1039360   ;;  %v1691_v10 = vld [vmem:[%s2001_s1 + $0x10] sm:$0xff]  ;;  %vm471_vm4 = vcmask 1031168   ;;  %v1697_v17 = vld [vmem:[%s2001_s1 + $0x18] sm:$0xff] }
   0xd   : > { %236 = vmatprep.mubr.f32.mxu0 %v1827_v0  ;;  %vm635_vm5 = vcmask 900096   ;;  %vm799_vm6 = vcmask 891904   ;;  %v1703_v26 = vld [vmem:[%s2001_s1 + $0x20] sm:$0xff]  ;;  %vm963_vm7 = vcmask 883712   ;;  %v1709_v31 = vld [vmem:[%s2001_s1 + $0x28] sm:$0xff]  ;;  %vm1127_vm8 = vcmask 752640  }
   0xe   : > { %s138_s14 = scalar_lea.vmem %s2000_s0, %s1798_s11  ;;  %v1715_v36 = vld [vmem:[%s2001_s1 + $0x30] sm:$0xff]  ;;  %vm1291_vm9 = vcmask 744448   ;;  %v1721_v41 = vld [vmem:[%s2001_s1 + $0x38] sm:$0xff]  ;;  %vm1455_vm10 = vcmask 736256   ;;  %v1727_v48 = vld [vmem:[%s2001_s1 + $0x40] sm:$0xff]  ;;  %vm1616_vm11 = vcmask 556032  }
   0xf   : > { %v145_v1 = vld [vmem:[%s138_s14 + $0x8] sm:$0xf]  ;;  %v1870_v2 = vld [vmem:[%s138_s14] sm:$0xff] }
  0x10   : > { %156 = vrot.lane.b32.xlu0 %v145_v1, %s1829_s15  ;;  %152 = vrot.lane.b32.xlu1 %v1870_v2, %s1829_s15  ;;  %v151_v3 = vcombine.high %v1870_v2, %v1870_v2 }
  0x14   : > { %469 = vrot.lane.b32.xlu0 %v145_v1, %s1830_s16  ;;  %465 = vrot.lane.b32.xlu1 %v1870_v2, %s1830_s16 }
  0x18   : > { %467 = vrot.lane.b32.xlu1 %v151_v3, %s1830_s16  ;;  %154 = vrot.lane.b32.xlu0 %v151_v3, %s1829_s15  ;;  %s1799_s15 = smul.u32 24, %s2004_s10 }
  0x1c   : > { %633 = vrot.lane.b32.xlu1 %v145_v1, %s1831_s17  ;;  %631 = vrot.lane.b32.xlu0 %v151_v3, %s1831_s17 }
  0x20   : > { %795 = vrot.lane.b32.xlu1 %v151_v3, %s1832_s18  ;;  %629 = vrot.lane.b32.xlu0 %v1870_v2, %s1831_s17 }
  0x24   : > { %793 = vrot.lane.b32.xlu1 %v1870_v2, %s1832_s18  ;;  %797 = vrot.lane.b32.xlu0 %v145_v1, %s1832_s18  ;;  %s143_s18 = scalar_lea.vmem %s2002_s2, %s1799_s15 }
  0x28   : > { %961 = vrot.lane.b32.xlu1 %v145_v1, %s1833_s19  ;;  %959 = vrot.lane.b32.xlu0 %v151_v3, %s1833_s19 }
  0x2c   : > { %1123 = vrot.lane.b32.xlu1 %v151_v3, %s1834_s20  ;;  %957 = vrot.lane.b32.xlu0 %v1870_v2, %s1833_s19 }
  0x30   : > { %1121 = vrot.lane.b32.xlu1 %v1870_v2, %s1834_s20  ;;  %1125 = vrot.lane.b32.xlu0 %v145_v1, %s1834_s20 }
  0x34   : > { %1289 = vrot.lane.b32.xlu1 %v145_v1, %s1835_s21  ;;  %1287 = vrot.lane.b32.xlu0 %v151_v3, %s1835_s21 }
  0x38   : > { %1451 = vrot.lane.b32.xlu1 %v151_v3, %s1836_s22  ;;  %1285 = vrot.lane.b32.xlu0 %v1870_v2, %s1835_s21 }
  0x3c   : > { %1449 = vrot.lane.b32.xlu1 %v1870_v2, %s1836_s22  ;;  %1453 = vrot.lane.b32.xlu0 %v145_v1, %s1836_s22 }
  0x82   : > { %v157_v5 = vpop.permute.xlu0 %156  ;;  %v153_v6 = vpop.permute.xlu1 %152 }
  0x83   : > { %1754 = vmatpush3.msk.msra.mxu1 %vm165_vm1, %v157_v5 }
  0x84   : > { %1756 = vmatmul.mubr.msk.f32.vlgmr.msra.gmra.mxu1 %vm161_vm2, %v1680_v4  ;;  %1758 = vmatprep.subr.mxu1 %v1827_v0 }
  0x85   : > { %1759 = vmatpush3.msk.msra.mxu1 %vm165_vm1, %v145_v1  ;;  %1760 = vmatprep.mubr.msk.f32.mxu1 %vm1828_vm0, %v1827_v0 }
  0x86   : > { %v470_v8 = vpop.permute.xlu0 %469  ;;  %v466_v9 = vpop.permute.xlu1 %465  ;;  %1763 = vmatprep.subr.mxu1 %v1827_v0 }
  0x88   : > { %1761 = vmatmul.mubr.msk.f32.vlgmr.msra.gmra.mxu1 %vm161_vm2, %v146_v7 }
  0x89   : > { %1764 = vmatpush3.msk.msra.mxu1 %vm165_vm1, %v470_v8  ;;  %1765 = vmatprep.mubr.msk.f32.mxu1 %vm1828_vm0, %v1827_v0 }
  0x8a   : > { %v468_v11 = vpop.permute.xlu1 %467  ;;  %v155_v12 = vpop.permute.xlu0 %154  ;;  %1768 = vmatprep.subr.mxu1 %v1827_v0 }
  0x8b   : > { %v160_v13 = vsel %vm158_vm3, %v155_v12, %v157_v5  ;;  %v159_v14 = vsel %vm158_vm3, %v153_v6, %v155_v12  ;;  %v473_v18 = vsel %vm471_vm4, %v468_v11, %v470_v8  ;;  %v472_v19 = vsel %vm471_vm4, %v466_v9, %v468_v11 }
  0x8c   : > { %1681 = vmatprep.subr.msk.mxu0 %vm165_vm1, %v160_v13  ;;  %1766 = vmatmul.mubr.msk.f32.vlgmr.msra.gmra.mxu1 %vm161_vm2, %v1691_v10 }
  0x8d   : > { %1682 = vmatpush1.msk.msra.mxu0 %vm165_vm1, %v159_v14  ;;  %1770 = vmatprep.mubr.msk.f32.mxu1 %vm1828_vm0, %v1827_v0 }
  0x8e   : > { %v634_v15 = vpop.permute.xlu1 %633  ;;  %1683 = vmatmul.mubr.msk.f32.vlgmr.msra.gmra.mxu0 %vm161_vm2, %v1680_v4  ;;  %1686 = vmatprep.subr.msk.mxu0 %vm165_vm1, %v151_v3  ;;  %v632_v16 = vpop.permute.xlu0 %631 }
  0x8f   : > { %1687 = vmatpush1.msk.msra.mxu0 %vm165_vm1, %v1870_v2  ;;  %1769 = vmatpush3.msk.msra.mxu1 %vm165_vm1, %v634_v15  ;;  %v637_v22 = vsel %vm635_vm5, %v632_v16, %v634_v15 }
  0x90   : > { %1692 = vmatprep.subr.msk.mxu0 %vm165_vm1, %v473_v18  ;;  %386 = vmatprep.mubr.f32.mxu0 %v1827_v0 }
  0x91   : > { %1773 = vmatprep.subr.mxu1 %v1827_v0  ;;  %1771 = vmatmul.mubr.msk.f32.vlgmr.msra.gmra.mxu1 %vm161_vm2, %v1697_v17 }
  0x92   : > { %v796_v20 = vpop.permute.xlu1 %795  ;;  %1688 = vmatmul.mubr.msk.f32.vlgmr.msra.gmra.mxu0 %vm161_vm2, %v146_v7  ;;  %v630_v21 = vpop.permute.xlu0 %629  ;;  %1775 = vmatprep.mubr.msk.f32.mxu1 %vm1828_vm0, %v1827_v0 }
  0x93   : > { %1693 = vmatpush1.msk.msra.mxu0 %vm165_vm1, %v472_v19  ;;  %547 = vmatprep.mubr.f32.mxu0 %v1827_v0  ;;  %v636_v23 = vsel %vm635_vm5, %v630_v21, %v632_v16 }
  0x94   : > { %1698 = vmatprep.subr.msk.mxu0 %vm165_vm1, %v637_v22 }
  0x96   : > { %v794_v24 = vpop.permute.xlu1 %793  ;;  %1694 = vmatmul.mubr.msk.f32.vlgmr.msra.gmra.mxu0 %vm161_vm2, %v1691_v10  ;;  %v798_v25 = vpop.permute.xlu0 %797 }
  0x97   : > { %1699 = vmatpush1.msk.msra.mxu0 %vm165_vm1, %v636_v23  ;;  %v801_v27 = vsel %vm799_vm6, %v796_v20, %v798_v25  ;;  %1774 = vmatpush3.msk.msra.mxu1 %vm165_vm1, %v798_v25  ;;  %v800_v28 = vsel %vm799_vm6, %v794_v24, %v796_v20 }
  0x98   : > { %1704 = vmatprep.subr.msk.mxu0 %vm165_vm1, %v801_v27  ;;  %711 = vmatprep.mubr.f32.mxu0 %v1827_v0 }
  0x99   : > { %1776 = vmatmul.mubr.msk.f32.vlgmr.msra.gmra.mxu1 %vm161_vm2, %v1703_v26  ;;  %1778 = vmatprep.subr.mxu1 %v1827_v0 }
  0x9a   : > { %v962_v29 = vpop.permute.xlu1 %961  ;;  %1700 = vmatmul.mubr.msk.f32.vlgmr.msra.gmra.mxu0 %vm161_vm2, %v1697_v17  ;;  %v960_v30 = vpop.permute.xlu0 %959  ;;  %1780 = vmatprep.mubr.msk.f32.mxu1 %vm1828_vm0, %v1827_v0 }
  0x9b   : > { %1705 = vmatpush1.msk.msra.mxu0 %vm165_vm1, %v800_v28  ;;  %v965_v32 = vsel %vm963_vm7, %v960_v30, %v962_v29  ;;  %1779 = vmatpush3.msk.msra.mxu1 %vm165_vm1, %v962_v29 }
  0x9c   : > { %1710 = vmatprep.subr.msk.mxu0 %vm165_vm1, %v965_v32  ;;  %875 = vmatprep.mubr.f32.mxu0 %v1827_v0 }
  0x9d   : > { %1781 = vmatmul.mubr.msk.f32.vlgmr.msra.gmra.mxu1 %vm161_vm2, %v1709_v31  ;;  %1783 = vmatprep.subr.mxu1 %v1827_v0 }
  0x9e   : > { %v1124_v33 = vpop.permute.xlu1 %1123  ;;  %1706 = vmatmul.mubr.msk.f32.vlgmr.msra.gmra.mxu0 %vm161_vm2, %v1703_v26  ;;  %v958_v34 = vpop.permute.xlu0 %957  ;;  %1785 = vmatprep.mubr.msk.f32.mxu1 %vm1828_vm0, %v1827_v0 }
  0x9f   : > { %v964_v35 = vsel %vm963_vm7, %v958_v34, %v960_v30  ;;  %1039 = vmatprep.mubr.f32.mxu0 %v1827_v0 }
  0xa0   : > { %1711 = vmatpush1.msk.msra.mxu0 %vm165_vm1, %v964_v35 }
  0xa2   : > { %v1122_v37 = vpop.permute.xlu1 %1121  ;;  %1712 = vmatmul.mubr.msk.f32.vlgmr.msra.gmra.mxu0 %vm161_vm2, %v1709_v31  ;;  %v1126_v38 = vpop.permute.xlu0 %1125 }
  0xa3   : > { %v1128_v39 = vsel %vm1127_vm8, %v1122_v37, %v1124_v33  ;;  %v1129_v40 = vsel %vm1127_vm8, %v1124_v33, %v1126_v38  ;;  %1784 = vmatpush3.msk.msra.mxu1 %vm165_vm1, %v1126_v38  ;;  %1203 = vmatprep.mubr.f32.mxu0 %v1827_v0 }
  0xa4   : > { %1716 = vmatprep.subr.msk.mxu0 %vm165_vm1, %v1129_v40  ;;  %1786 = vmatmul.mubr.msk.f32.vlgmr.msra.gmra.mxu1 %vm161_vm2, %v1715_v36 }
  0xa5   : > { %1717 = vmatpush1.msk.msra.mxu0 %vm165_vm1, %v1128_v39  ;;  %1788 = vmatprep.subr.mxu1 %v1827_v0 }
  0xa6   : > { %v1290_v42 = vpop.permute.xlu1 %1289  ;;  %1718 = vmatmul.mubr.msk.f32.vlgmr.msra.gmra.mxu0 %vm161_vm2, %v1715_v36  ;;  %v1288_v43 = vpop.permute.xlu0 %1287  ;;  %1790 = vmatprep.mubr.msk.f32.mxu1 %vm1828_vm0, %v1827_v0 }
  0xa7   : > { %v1293_v44 = vsel %vm1291_vm9, %v1288_v43, %v1290_v42  ;;  %1789 = vmatpush3.msk.msra.mxu1 %vm165_vm1, %v1290_v42  ;;  %1367 = vmatprep.mubr.f32.mxu0 %v1827_v0 }
  0xa8   : > { %1722 = vmatprep.subr.msk.mxu0 %vm165_vm1, %v1293_v44  ;;  %1791 = vmatmul.mubr.msk.f32.vlgmr.msra.gmra.mxu1 %vm161_vm2, %v1721_v41 }
  0xa9   : > { %1793 = vmatprep.subr.mxu1 %v1827_v0  ;;  %1795 = vmatprep.mubr.msk.f32.mxu1 %vm1828_vm0, %v1827_v0 }
  0xaa   : > { %v1452_v45 = vpop.permute.xlu1 %1451  ;;  %v1286_v46 = vpop.permute.xlu0 %1285 }
  0xab   : > { %v1292_v47 = vsel %vm1291_vm9, %v1286_v46, %v1288_v43 }
  0xac   : > { %1723 = vmatpush1.msk.msra.mxu0 %vm165_vm1, %v1292_v47 }
  0xad   : > { %1724 = vmatmul.mubr.msk.f32.vlgmr.msra.gmra.mxu0 %vm161_vm2, %v1721_v41 }
  0xae   : > { %v1450_v49 = vpop.permute.xlu1 %1449  ;;  %v1454_v50 = vpop.permute.xlu0 %1453  ;;  %1531 = vmatprep.mubr.f32.mxu0 %v1827_v0 }
  0xaf   : > { %v1456_v51 = vsel %vm1455_vm10, %v1450_v49, %v1452_v45  ;;  %v1457_v52 = vsel %vm1455_vm10, %v1452_v45, %v1454_v50  ;;  %1794 = vmatpush3.msk.msra.mxu1 %vm165_vm1, %v1454_v50 }
  0xb0   : > { %1728 = vmatprep.subr.msk.mxu0 %vm165_vm1, %v1457_v52  ;;  %1796 = vmatmul.mubr.msk.f32.vlgmr.msra.gmra.mxu1 %vm161_vm2, %v1727_v48 }
  0xb1   : > { %1729 = vmatpush1.msk.msra.mxu0 %vm165_vm1, %v1456_v51 }
  0xb2   : > { %1730 = vmatmul.mubr.msk.f32.vlgmr.msra.gmra.mxu0 %vm161_vm2, %v1727_v48 }
 0x144   : > { %v309_v53 = vpop.f32.mrf.mxu1 }
 0x146   : > { %v1757_v54 = vpop.f32.mrf.mxu1 }
 0x148   : > { %v459_v55 = vpop.f32.mrf.mxu1 }
 0x149   : > { %v460_v5 = vadd.f32 %v459_v55, %v309_v53 }
 0x14a   : > { %v1762_v56 = vpop.f32.mrf.mxu1 }
 0x14c   : > { %v620_v57 = vpop.f32.mrf.mxu1 }
 0x14d   : > { %v626_v10 = vadd.f32 %v620_v57, %v460_v5 }
 0x14e   : > { %v238_v58 = vpop.f32.mrf.mxu0  ;;  %v1767_v59 = vpop.f32.mrf.mxu1 }
 0x150   : > { %v240_v60 = vpop.f32.mrf.mxu0 }
 0x151   : > { %v784_v61 = vpop.f32.mrf.mxu1 }
 0x152   : > { %v388_v62 = vpop.f32.mrf.mxu0  ;;  %v790_v14 = vadd.f32 %v784_v61, %v626_v10 }
 0x153   : > { %v1772_v63 = vpop.f32.mrf.mxu1  ;;  %v389_v17 = vadd.f32 %v388_v62, %v238_v58 }
 0x154   : > { %v390_v0 = vpop.f32.mrf.mxu0 }
 0x155   : > { %v391_v19 = vadd.f32 %v390_v0, %v240_v60 }
 0x156   : > { %v549_v1 = vpop.f32.mrf.mxu0 }
 0x157   : > { %v624_v20 = vadd.f32 %v549_v1, %v389_v17 }
 0x158   : > { %v551_v2 = vpop.f32.mrf.mxu0 }
 0x159   : > { %v948_v3 = vpop.f32.mrf.mxu1  ;;  %v625_v24 = vadd.f32 %v551_v2, %v391_v19 }
 0x15a   : > { %v713_v4 = vpop.f32.mrf.mxu0  ;;  %v954_v21 = vadd.f32 %v948_v3, %v790_v14 }
 0x15b   : > { %v1777_v6 = vpop.f32.mrf.mxu1  ;;  %v788_v25 = vadd.f32 %v713_v4, %v624_v20 }
 0x15c   : > { %v715_v7 = vpop.f32.mrf.mxu0 }
 0x15d   : > { %v1112_v8 = vpop.f32.mrf.mxu1  ;;  %v789_v27 = vadd.f32 %v715_v7, %v625_v24 }
 0x15e   : > { %v877_v9 = vpop.f32.mrf.mxu0  ;;  %v1118_v29 = vadd.f32 %v1112_v8, %v954_v21 }
 0x15f   : > { %v1782_v11 = vpop.f32.mrf.mxu1  ;;  %v952_v28 = vadd.f32 %v877_v9, %v788_v25 }
 0x160   : > { %v879_v12 = vpop.f32.mrf.mxu0 }
 0x161   : > { %v953_v31 = vadd.f32 %v879_v12, %v789_v27 }
 0x162   : > { %v1041_v13 = vpop.f32.mrf.mxu0 }
 0x163   : > { %v1116_v32 = vadd.f32 %v1041_v13, %v952_v28 }
 0x164   : > { %v1043_v15 = vpop.f32.mrf.mxu0  ;;  %v1276_v16 = vpop.f32.mrf.mxu1 }
 0x165   : > { %v1282_v33 = vadd.f32 %v1276_v16, %v1118_v29  ;;  %v1117_v35 = vadd.f32 %v1043_v15, %v953_v31 }
 0x166   : > { %v1787_v18 = vpop.f32.mrf.mxu1  ;;  %v1205_v22 = vpop.f32.mrf.mxu0 }
 0x167   : > { %v1280_v36 = vadd.f32 %v1205_v22, %v1116_v32 }
 0x168   : > { %v1440_v23 = vpop.f32.mrf.mxu1  ;;  %v1207_v30 = vpop.f32.mrf.mxu0 }
 0x169   : > { %v1446_v37 = vadd.f32 %v1440_v23, %v1282_v33  ;;  %v1281_v40 = vadd.f32 %v1207_v30, %v1117_v35 }
 0x16a   : > { %v1792_v26 = vpop.f32.mrf.mxu1 }
 0x16d   : > { %v1369_v34 = vpop.f32.mrf.mxu0 }
 0x16e   : > { %v1444_v41 = vadd.f32 %v1369_v34, %v1280_v36 }
 0x16f   : > { %v1371_v38 = vpop.f32.mrf.mxu0 }
 0x170   : > { %v1604_v39 = vpop.f32.mrf.mxu1  ;;  %v1445_v45 = vadd.f32 %v1371_v38, %v1281_v40 }
 0x171   : > { %v1610_v42 = vadd.f32 %v1604_v39, %v1446_v37 }
 0x172   : > { %v1533_v43 = vpop.f32.mrf.mxu0  ;;  %v1797_v44 = vpop.f32.mrf.mxu1 }
 0x173   : > { %v1613_v46 = vmax.f32 %v1610_v42, 0.0  ;;  %v1608_v47 = vadd.f32 %v1533_v43, %v1444_v41 }
 0x174   : > { %v1535_v48 = vpop.f32.mrf.mxu0 }
 0x175   : > { %v1611_v49 = vmax.f32 %v1608_v47, 0.0  ;;  %1617 = vst.msk [vmem:[%s143_s18 + $0x10] sm:$0xff] %vm1616_vm11, %v1613_v46  ;;  %v1609_v50 = vadd.f32 %v1535_v48, %v1445_v45 }
 0x177   : > { %1614 = vst [vmem:[%s143_s18] sm:$0xff] %v1611_v49  ;;  %v1612_v51 = vmax.f32 %v1609_v50, 0.0 }
 0x179   : > { %1615 = vst [vmem:[%s143_s18 + $0x8] sm:$0xff] %v1612_v51 }
 0x17a PF: > { %s12_s9 = sadd.s32 1, %s1825_s9  }
 0x17b   : > { %p9_p4 = scmp.ge.s32.totalorder %s12_s9, 4  }
 0x17d   :  { %11 = sbr.rel (!%p9_p4) target bundleno = 1 (0x1), region = 66 }

</bundles_post_ra>
